<compile_context>
chip_gen: v6e
topology: v6e:2x2x1
jax: 0.10.0
libtpu: 0.0.40
codegen_flags: <defaults>
</compile_context>

<pallas_src>
import functools

import numpy as np
import jax
import jax.numpy as jnp
from jax.experimental import pallas as pl
from jax.experimental.pallas import tpu as pltpu

GEN_EPS = 1e-7                                  # GENConv message epsilon
BN_EPS = 1e-5                                   # torch BatchNorm1d default eps
BN_SCALE = float(1.0 / np.sqrt(1.0 + BN_EPS))   # eval-mode BN with default init
LANE = 128
VMEM_LIMIT = 32 * 1024 * 1024                   # actual usage ~1-2 MiB; safe on v5e/v6e/v7x


def _round_up(n, m):
    return ((n + m - 1) // m) * m


def _pick_tiles(n_pad):
    """src tile 256 fills the v6e/v7x 256x256 MXU; dst tile keeps >= 2 tiles so
    dimension_semantics=("parallel", ...) can feed both v7x TensorCores."""
    tile_src = 256
    tile_dst = 256 if n_pad >= 512 else 128
    return tile_dst, tile_src


# ---------------- pass 1: global per-feature max of the messages ----------------
def _msg_max_kernel(x_ref, *rest, has_lin):
    if has_lin:
        wsrc_ref, bsrc_ref, m_ref = rest
        xs = jnp.dot(x_ref[...], wsrc_ref[...],
                     preferred_element_type=jnp.float32) + bsrc_ref[...]
    else:
        (m_ref,) = rest
        xs = x_ref[...].astype(jnp.float32)
    msg = jnp.maximum(xs, 0.0) + GEN_EPS
    tile_max = jnp.max(msg, axis=0, keepdims=True)

    @pl.when(pl.program_id(0) == 0)
    def _init():
        m_ref[...] = jnp.zeros_like(m_ref)      # messages are >= GEN_EPS > 0

    m_ref[...] = jnp.maximum(m_ref[...], tile_max)


# ---- pass 2: per-source RHS = [exp(msg-m)*msg, exp(msg-m)] in bf16, once per layer ----
def _rhs_kernel(x_ref, m_ref, *rest, has_lin, d_pad):
    if has_lin:
        wsrc_ref, bsrc_ref, rhs_ref = rest
        xs = jnp.dot(x_ref[...], wsrc_ref[...],
                     preferred_element_type=jnp.float32) + bsrc_ref[...]
    else:
        (rhs_ref,) = rest
        xs = x_ref[...].astype(jnp.float32)
    msg = jnp.maximum(xs, 0.0) + GEN_EPS
    e = jnp.exp(msg - m_ref[...])               # <= 1 thanks to the global max shift
    # Write the two 128-aligned halves directly (no jnp.concatenate copy).
    rhs_ref[:, :d_pad] = (e * msg).astype(rhs_ref.dtype)
    rhs_ref[:, d_pad:] = e.astype(rhs_ref.dtype)


# ---- pass 3: block-sparse A @ RHS accumulation + per-dst epilogue (residual/MLP/BN/ReLU) ----
def _aggregate_kernel(ids_ref, cnt_ref, a_ref, rhs_ref, x_dst_ref, *rest,
                      has_lin, do_bn, d_pad):
    if has_lin:
        (wdst_ref, bdst_ref, w1_ref, b1_ref, w2_ref, b2_ref,
         out_ref, acc_ref) = rest
    else:
        (w1_ref, b1_ref, w2_ref, b2_ref, out_ref, acc_ref) = rest

    i = pl.program_id(0)
    k = pl.program_id(1)

    @pl.when(k == 0)
    def _init():
        acc_ref[...] = jnp.zeros_like(acc_ref)

    # Inner loop is a single bf16 MXU matmul; padded/ragged steps are skipped.
    @pl.when(k < cnt_ref[i])
    def _accum():
        acc_ref[...] += jnp.dot(a_ref[...], rhs_ref[...],
                                preferred_element_type=jnp.float32)

    @pl.when(k == pl.num_programs(1) - 1)
    def _finalize():
        num = acc_ref[:, :d_pad]
        den = acc_ref[:, d_pad:]
        inv = pl.reciprocal(jnp.where(den > 0.0, den, 1.0), approx=True)
        agg = jnp.where(den > 0.0, num * inv, 0.0)     # isolated dst nodes -> 0

        xd = x_dst_ref[...]
        if has_lin:
            xd = jnp.dot(xd, wdst_ref[...],
                         preferred_element_type=jnp.float32) + bdst_ref[...]
        else:
            xd = xd.astype(jnp.float32)
        y0 = agg + xd
        h1 = jnp.dot(y0.astype(jnp.bfloat16), w1_ref[...],
                     preferred_element_type=jnp.float32) + b1_ref[...]
        h1 = jnp.maximum(h1 * BN_SCALE, 0.0)   # MLP-internal BatchNorm1d (eval) + ReLU
        y = jnp.dot(h1.astype(jnp.bfloat16), w2_ref[...],
                    preferred_element_type=jnp.float32) + b2_ref[...]
        if do_bn:
            y = y * BN_SCALE                   # GENBlock BatchNorm1d (eval, default stats)
        y = jnp.maximum(y, 0.0)
        # Dropout is identity in inference mode.
        out_ref[...] = y.astype(out_ref.dtype)


def gen_layer(x_pad, adj_bf16, ids, cnt, max_nnz, params, *,
              do_bn, tile_dst, tile_src):
    """One GENBlock layer: max pre-pass -> RHS precompute -> block-sparse aggregation."""
    n_pad, d_pad = x_pad.shape
    n_src_tiles = n_pad // tile_src
    n_dst_tiles = n_pad // tile_dst
    has_lin = params["has_lin"]

    def full1(arr):   # full-array spec for 1-D-grid passes
        return pl.BlockSpec(arr.shape, lambda i: (0, 0))

    # ---- pass 1: global per-feature message max ----
    max_in = [x_pad] + ([params["wsrc"], params["bsrc"]] if has_lin else [])
    max_specs = [pl.BlockSpec((tile_src, d_pad), lambda i: (i, 0))] \
        + ([full1(params["wsrc"]), full1(params["bsrc"])] if has_lin else [])
    m_glob = pl.pallas_call(
        functools.partial(_msg_max_kernel, has_lin=has_lin),
        out_shape=jax.ShapeDtypeStruct((1, d_pad), jnp.float32),
        grid_spec=pltpu.PrefetchScalarGridSpec(
            num_scalar_prefetch=0, grid=(n_src_tiles,),
            in_specs=max_specs,
            out_specs=pl.BlockSpec((1, d_pad), lambda i: (0, 0))),
        compiler_params=pltpu.CompilerParams(
            dimension_semantics=("arbitrary",), vmem_limit_bytes=VMEM_LIMIT),
    )(*max_in)

    # ---- pass 2: bf16 RHS precompute (hoists lin_src/relu/exp out of the main loop) ----
    rhs_in = [x_pad, m_glob] + ([params["wsrc"], params["bsrc"]] if has_lin else [])
    rhs_specs = [pl.BlockSpec((tile_src, d_pad), lambda i: (i, 0)), full1(m_glob)] \
        + ([full1(params["wsrc"]), full1(params["bsrc"])] if has_lin else [])
    rhs = pl.pallas_call(
        functools.partial(_rhs_kernel, has_lin=has_lin, d_pad=d_pad),
        out_shape=jax.ShapeDtypeStruct((n_pad, 2 * d_pad), jnp.bfloat16),
        grid_spec=pltpu.PrefetchScalarGridSpec(
            num_scalar_prefetch=0, grid=(n_src_tiles,),
            in_specs=rhs_specs,
            out_specs=pl.BlockSpec((tile_src, 2 * d_pad), lambda i: (i, 0))),
        compiler_params=pltpu.CompilerParams(
            dimension_semantics=("parallel",), vmem_limit_bytes=VMEM_LIMIT),
    )(*rhs_in)

    # ---- pass 3: block-sparse aggregation + epilogue ----
    weight_names = (("wdst", "bdst") if has_lin else ()) + ("w1", "b1", "w2", "b2")
    weights = [params[name] for name in weight_names]

    def fullw(arr):
        return pl.BlockSpec(arr.shape, lambda i, k, ids_r, cnt_r: (0, 0))

    return pl.pallas_call(
        functools.partial(_aggregate_kernel, has_lin=has_lin, do_bn=do_bn, d_pad=d_pad),
        out_shape=jax.ShapeDtypeStruct((n_pad, d_pad), jnp.bfloat16),
        grid_spec=pltpu.PrefetchScalarGridSpec(
            num_scalar_prefetch=2,               # (ids, cnt) land in SMEM
            grid=(n_dst_tiles, max_nnz),
            in_specs=[
                # adjacency tile: only nonzero (dst, src) tiles are ever DMAed
                pl.BlockSpec((tile_dst, tile_src),
                             lambda i, k, ids_r, cnt_r: (i, ids_r[i, k])),
                # matching precomputed RHS tile
                pl.BlockSpec((tile_src, 2 * d_pad),
                             lambda i, k, ids_r, cnt_r: (ids_r[i, k], 0)),
                # destination-node features (for the lin_dst residual path)
                pl.BlockSpec((tile_dst, d_pad),
                             lambda i, k, ids_r, cnt_r: (i, 0)),
            ] + [fullw(w) for w in weights],
            out_specs=pl.BlockSpec((tile_dst, d_pad),
                                   lambda i, k, ids_r, cnt_r: (i, 0)),
            scratch_shapes=[pltpu.VMEM((tile_dst, 2 * d_pad), jnp.float32)]),
        compiler_params=pltpu.CompilerParams(
            dimension_semantics=("parallel", "arbitrary"),   # dst tiles shard across TCs
            vmem_limit_bytes=VMEM_LIMIT),
    )(ids, cnt, adj_bf16, rhs, x_pad, *weights)


def _block_sparsity(adj_pad_np, tile_dst, tile_src):
    """Host-side per-dst-tile lists of nonzero src-tile indices (for scalar prefetch)."""
    n_pad = adj_pad_np.shape[0]
    n_dst, n_src = n_pad // tile_dst, n_pad // tile_src
    blk = adj_pad_np.reshape(n_dst, tile_dst, n_src, tile_src).sum(axis=(1, 3)) > 0
    counts = blk.sum(axis=1).astype(np.int32)
    max_nnz = max(1, int(counts.max())) if counts.size else 1
    ids = np.zeros((n_dst, max_nnz), np.int32)
    for i in range(n_dst):
        nz = np.nonzero(blk[i])[0]
        if nz.size:
            ids[i, :nz.size] = nz
            ids[i, nz.size:] = nz[-1]          # pad with a valid tile id; compute is masked off
    return ids, counts, max_nnz


def gens_block_forward(x, adj_np, layer_params, mask_idx, *, do_bn):
    """GENsBlock.forward: stack of GEN layers, collect masked rows per layer."""
    n, d_in = x.shape
    d_pad = layer_params[0]["b2"].shape[1]
    n_pad = _round_up(max(n, 256), 256)
    tile_dst, tile_src = _pick_tiles(n_pad)

    # bf16 inter-layer activations halve the x/out HBM streams; all consumers are
    # bf16 MXU matmuls / relu anyway.
    x_pad = jnp.zeros((n_pad, d_pad), jnp.bfloat16).at[:n, :d_in].set(
        x.astype(jnp.bfloat16))

    adj_pad_np = np.zeros((n_pad, n_pad), np.float32)
    adj_pad_np[:n, :n] = np.asarray(adj_np, np.float32)
    adj_bf16 = jnp.asarray(adj_pad_np, jnp.bfloat16)   # 0/1 mask -> exact in bf16
    ids_np, cnt_np, max_nnz = _block_sparsity(adj_pad_np, tile_dst, tile_src)
    ids = jnp.asarray(ids_np)
    cnt = jnp.asarray(cnt_np)

    h = []
    for p in layer_params:
        x_pad = gen_layer(x_pad, adj_bf16, ids, cnt, max_nnz, p,
                          do_bn=do_bn, tile_dst=tile_dst, tile_src=tile_src)
        # TODO(synk): the layer stack + x[mask] gather stay as separate XLA ops —
        # each layer's aggregation needs ALL nodes' previous-layer outputs
        # (cross-tile dependency), so fusing the layers into one pallas_call is not done.
        h.append(jnp.take(x_pad, mask_idx, axis=0)[:, :p["d_out"]].astype(jnp.float32))
    return h


def init_gen_layer_params(key, d_in, d_out, d_pad):
    """Deterministic synthetic init mirroring GENConv's parameter shapes, zero-padded
    to lane-dense (128-wide) slabs. Weights bf16 (f32xf32 MXU is ~3x slower), biases f32."""
    has_lin = d_in != d_out
    h_dim = 2 * d_out
    h_pad = _round_up(h_dim, LANE)
    ks = jax.random.split(key, 8)
    scale = 0.1

    def padded_w(k, rows, cols, rows_pad, cols_pad):
        w = scale * jax.random.normal(k, (rows, cols), jnp.float32)
        return jnp.zeros((rows_pad, cols_pad), jnp.float32).at[:rows, :cols].set(
            w).astype(jnp.bfloat16)

    def padded_b(k, cols, cols_pad):
        b = scale * jax.random.normal(k, (1, cols), jnp.float32)
        return jnp.zeros((1, cols_pad), jnp.float32).at[:, :cols].set(b)

    p = dict(has_lin=has_lin, d_out=d_out)
    if has_lin:   # lin_src / lin_dst only exist in GENConv when d_in != d_out
        p["wsrc"] = padded_w(ks[0], d_in, d_out, d_pad, d_pad)
        p["bsrc"] = padded_b(ks[1], d_out, d_pad)
        p["wdst"] = padded_w(ks[2], d_in, d_out, d_pad, d_pad)
        p["bdst"] = padded_b(ks[3], d_out, d_pad)
    p["w1"] = padded_w(ks[4], d_out, h_dim, d_pad, h_pad)
    p["b1"] = padded_b(ks[5], h_dim, h_pad)
    p["w2"] = padded_w(ks[6], h_dim, d_out, h_pad, d_pad)
    p["b2"] = padded_b(ks[7], d_out, d_pad)
    return p


if __name__ == "__main__":
    # Shapes consistent with the module:
    #   layer_num=2, n_features=8, gnns_hidden=[32, 16], do_bn=True, dropout=0.5, bias=True
    # 256 nodes with tile_dst=128 / tile_src=256 exercises a (2, 1) block-sparse grid
    # (>= 2 dst tiles keeps the "parallel" axis feeding both v7x TensorCores).
    N_NODES = 256
    N_FEATURES = 8
    GNNS_HIDDEN = [32, 16]
    DO_BN = True

    D_PAD = _round_up(max([N_FEATURES] + GNNS_HIDDEN), LANE)   # lane-dense width (128)

    key = jax.random.PRNGKey(0)
    key, kx = jax.random.split(key)
    x = jax.random.normal(kx, (N_NODES, N_FEATURES), jnp.float32)

    # Synthetic edge_index (source row, target row), PyG convention: flow src -> dst.
    src = np.concatenate([np.arange(N_NODES), np.arange(N_NODES)])
    dst = np.concatenate([(np.arange(N_NODES) + 1) % N_NODES,
                          (np.arange(N_NODES) + 5) % N_NODES])
    edge_index = np.stack([src, dst], axis=0)

    # Dense adjacency: A[dst, src] = 1  (each dst row sums over its in-neighbors)
    adj_np = np.zeros((N_NODES, N_NODES), np.float32)
    adj_np[edge_index[1], edge_index[0]] = 1.0

    # Node mask (boolean) -> static index set for gathering x[mask]
    mask_np = (np.arange(N_NODES) % 3 == 0)
    mask_idx = jnp.asarray(np.nonzero(mask_np)[0], jnp.int32)

    # Deterministic parameter init per layer (pre-padded to lane-dense slabs)
    dims = [N_FEATURES] + GNNS_HIDDEN
    layer_params = []
    for i in range(len(GNNS_HIDDEN)):
        key, kp = jax.random.split(key)
        layer_params.append(init_gen_layer_params(kp, dims[i], dims[i + 1], D_PAD))

    outs = gens_block_forward(x, adj_np, layer_params, mask_idx, do_bn=DO_BN)
    for o in outs:
        jax.block_until_ready(o)

    expected_shapes = [(int(mask_np.sum()), d) for d in GNNS_HIDDEN]
    assert [tuple(o.shape) for o in outs] == expected_shapes, \
        [tuple(o.shape) for o in outs]
    assert all(bool(jnp.all(jnp.isfinite(o))) for o in outs)
    print("KERNEL_OK")
</pallas_src>

<mosaic_0001>
module attributes {stable_mosaic.version = 11 : i64} {
  func.func @_msg_max_kernel(%arg0: i32, %arg1: memref<256x128xbf16, #tpu.memory_space<vmem>>, %arg2: memref<128x128xbf16, #tpu.memory_space<vmem>>, %arg3: memref<1x128xf32, #tpu.memory_space<vmem>>, %arg4: memref<1x128xf32, #tpu.memory_space<vmem>>) attributes {dimension_semantics = [#tpu.dimension_semantics<arbitrary>], iteration_bounds = array<i64: 1>, scalar_prefetch = 0 : i64, scratch_operands = 0 : i64, tpu.core_type = #tpu.core_type<tc>, window_params = [{transform_indices = @transform_0, window_bounds = array<i64: 256, 128>}, {pipeline_mode = #tpu.pipeline_mode<synchronous>, transform_indices = @transform_1, window_bounds = array<i64: 128, 128>}, {pipeline_mode = #tpu.pipeline_mode<synchronous>, transform_indices = @transform_2, window_bounds = array<i64: 1, 128>}, {pipeline_mode = #tpu.pipeline_mode<synchronous>, transform_indices = @transform_3, window_bounds = array<i64: 1, 128>}]} {
    %c0 = arith.constant 0 : index
    %c0_0 = arith.constant 0 : index
    %0 = vector.load %arg1[%c0, %c0_0] : memref<256x128xbf16, #tpu.memory_space<vmem>>, vector<256x128xbf16>
    %c0_1 = arith.constant 0 : index
    %c0_2 = arith.constant 0 : index
    %1 = vector.load %arg2[%c0_1, %c0_2] : memref<128x128xbf16, #tpu.memory_space<vmem>>, vector<128x128xbf16>
    %cst = arith.constant dense<0.000000e+00> : vector<256x128xf32>
    %2 = tpu.matmul %0, %1, %cst {dimension_numbers = #tpu.dot_dimension_numbers<[1], [0], [0], [1], [0, 0, 1, 1], [], []>} : vector<256x128xbf16>, vector<128x128xbf16>, vector<256x128xf32> -> vector<256x128xf32>
    %c0_3 = arith.constant 0 : index
    %c0_4 = arith.constant 0 : index
    %3 = vector.load %arg3[%c0_3, %c0_4] : memref<1x128xf32, #tpu.memory_space<vmem>>, vector<1x128xf32>
    %4 = vector.broadcast %3 : vector<1x128xf32> to vector<256x128xf32>
    %5 = arith.addf %2, %4 : vector<256x128xf32>
    %cst_5 = arith.constant 0.000000e+00 : f32
    %6 = vector.broadcast %cst_5 : f32 to vector<256x128xf32>
    %7 = arith.maximumf %5, %6 : vector<256x128xf32>
    %cst_6 = arith.constant 1.000000e-07 : f32
    %8 = vector.broadcast %cst_6 : f32 to vector<256x128xf32>
    %9 = arith.addf %7, %8 : vector<256x128xf32>
    %cst_7 = arith.constant dense<0xFF800000> : vector<128xf32>
    %10 = vector.multi_reduction <maximumf>, %9, %cst_7 [0] : vector<256x128xf32> to vector<128xf32>
    %11 = vector.shape_cast %10 : vector<128xf32> to vector<1x128xf32>
    %c0_i32 = arith.constant 0 : i32
    %12 = arith.cmpi eq, %arg0, %c0_i32 : i32
    %13 = arith.extui %12 : i1 to i32
    %c0_i32_8 = arith.constant 0 : i32
    %14 = arith.cmpi ne, %13, %c0_i32_8 : i32
    scf.if %14 {
      %cst_13 = arith.constant 0.000000e+00 : f32
      %18 = vector.broadcast %cst_13 : f32 to vector<1x128xf32>
      %c0_14 = arith.constant 0 : index
      %c0_15 = arith.constant 0 : index
      %19 = vector.load %arg4[%c0_14, %c0_15] : memref<1x128xf32, #tpu.memory_space<vmem>>, vector<1x128xf32>
      tpu.vector_store %arg4[%c0_14, %c0_15], %18 {strides = array<i32>} : memref<1x128xf32, #tpu.memory_space<vmem>>, vector<1x128xf32>,
    } else {
    }
    %c0_9 = arith.constant 0 : index
    %c0_10 = arith.constant 0 : index
    %15 = vector.load %arg4[%c0_9, %c0_10] : memref<1x128xf32, #tpu.memory_space<vmem>>, vector<1x128xf32>
    %16 = arith.maximumf %15, %11 : vector<1x128xf32>
    %c0_11 = arith.constant 0 : index
    %c0_12 = arith.constant 0 : index
    %17 = vector.load %arg4[%c0_11, %c0_12] : memref<1x128xf32, #tpu.memory_space<vmem>>, vector<1x128xf32>
    tpu.vector_store %arg4[%c0_11, %c0_12], %16 {strides = array<i32>} : memref<1x128xf32, #tpu.memory_space<vmem>>, vector<1x128xf32>,
    return
  }
  func.func @transform_0(%arg0: i32) -> (i32, i32) {
    %c0_i32 = arith.constant 0 : i32
    %c0_i32_0 = arith.constant 0 : i32
    return %arg0, %c0_i32 : i32, i32
  }
  func.func @transform_1(%arg0: i32) -> (i32, i32) {
    %c0_i32 = arith.constant 0 : i32
    %c0_i32_0 = arith.constant 0 : i32
    %c0_i32_1 = arith.constant 0 : i32
    return %c0_i32, %c0_i32_0 : i32, i32
  }
  func.func @transform_2(%arg0: i32) -> (i32, i32) {
    %c0_i32 = arith.constant 0 : i32
    %c0_i32_0 = arith.constant 0 : i32
    %c0_i32_1 = arith.constant 0 : i32
    return %c0_i32, %c0_i32_0 : i32, i32
  }
  func.func @transform_3(%arg0: i32) -> (i32, i32) {
    %c0_i32 = arith.constant 0 : i32
    %c0_i32_0 = arith.constant 0 : i32
    %c0_i32_1 = arith.constant 0 : i32
    return %c0_i32, %c0_i32_0 : i32, i32
  }
}

</mosaic_0001>

<bundles_post_ra>
// kernel: tpu_custom_call.1
= control target key start
LH: loop header
LB: loop body
LE: loop exit
PB: predicated region body
PF: predicated region fallthrough
CT: control target
= control target key end

     0   :  { %8 = vsyncpa [#allocation3], 0  ;;  %s831_s0 = inlined_call_operand.hbm [shape: bf16[256,128], index: 0, kind: input, shape index: {}]   ;;  %s832_s1 = inlined_call_operand.hbm [shape: bf16[128,128], index: 1, kind: input, shape index: {}]   ;;  %s833_s2 = inlined_call_operand.vmem [shape: f32[1,128], index: 2, kind: input, shape index: {}]   ;;  %s834_s3 = inlined_call_operand.hbm [shape: f32[1,128], index: 3, kind: output, shape index: {}]  }
   0x1   :  { %9 = vsyncpa [#allocation6], 0 }
   0x2   :  { %10 = vsyncpa [#allocation4], 0  ;;  %s738_s12 = smov [#allocation2]  }
   0x3   :  { %s16_s13 = sshll.u32 %s738_s12, 4  ;;  %s17_s13 = int_to_ptr.vmem [resolvable:$true] %s16_s13 }
   0x4   :  { %s680_s14 = scalar_lea.vmem %s17_s13, 2048  ;;  %p685_p1 = scmp.lt.s32.totalorder %s17_s13, %s17_s13 }
   0x5   :  { %p681_p0 = scmp.ne.s32.totalorder %s17_s13, %s680_s14  ;;  %p686_p2 = scmp.lt.s32.totalorder %s680_s14, %s680_s14 }
   0x7   :  { %p687_p3 = por %p686_p2, %p685_p1 }
   0x9   :  { %p688_p4 = pnand %p687_p3, %p681_p0 }
   0xb   :  { %691 = shalt.err (!%p688_p4)
}
   0xc   :  { %s739_s15 = smov 64   ;;  %s740_s16 = smov 4  }
   0xd   :  { %22 = dma.hbm_to_vmem [thread:$0]  %s831_s0, 2048, %s17_s13, [#allocation3], %s739_s15, %s739_s15, %s740_s16  }
   0xe   :  { %s741_s19 = smov [#allocation5]  }
   0xf   :  { %s28_s20 = sshll.u32 %s741_s19, 4  ;;  %s29_s20 = int_to_ptr.vmem [resolvable:$true] %s28_s20 }
  0x10   :  { %s700_s21 = scalar_lea.vmem %s29_s20, 1024  ;;  %p705_p6 = scmp.lt.s32.totalorder %s29_s20, %s29_s20 }
  0x11   :  { %p701_p5 = scmp.ne.s32.totalorder %s29_s20, %s700_s21  ;;  %p706_p7 = scmp.lt.s32.totalorder %s700_s21, %s700_s21 }
  0x13   :  { %p707_p8 = por %p706_p7, %p705_p6 }
  0x15   :  { %p708_p9 = pnand %p707_p8, %p701_p5 }
  0x17   :  { %711 = shalt.err (!%p708_p9)
}
  0x18   :  { %34 = dma.hbm_to_vmem [thread:$0]  %s832_s1, 1024, %s29_s20, [#allocation6], %s739_s15, %s739_s15, %s740_s16  }
  0x19   :  { %732 = dma.done.wait [#allocation3], 2048  }
  0x1a   :  { %733 = vsyncadd [#allocation3], 4294965248 }
  0x1b   :  { %734 = dma.done.wait [#allocation6], 1024  }
  0x1c   :  { %735 = vsyncadd [#allocation6], 4294966272  ;;  %v648_v0 = vld [vmem:[#allocation5 + $0x38] sm:$0xff]   ;;  %v649_v1 = vld [vmem:[#allocation5 + $0x30] sm:$0xff]   ;;  %v742_v24 = vmov 0.0  }
  0x1d   :  { %578 = vmatprep.subr.bf16.mxu0 %v648_v0  ;;  %626 = vmatprep.subr.bf16.mxu1 %v648_v0  ;;  %v650_v2 = vld [vmem:[#allocation5 + $0x28] sm:$0xff]   ;;  %v651_v3 = vld [vmem:[#allocation5 + $0x20] sm:$0xff]   ;;  %v652_v6 = vld [vmem:[#allocation5 + $0x18] sm:$0xff]   ;;  %509 = vst [vmem:[#allocation7] sm:$0x1] %v742_v24 }
  0x1e   :  { %579 = vmatpush3.bf16.msra.mxu0 %v648_v0  ;;  %634 = vmatpush3.bf16.msra.mxu1 %v648_v0  ;;  %v656_v4 = vld [vmem:[#allocation2] sm:$0xff]   ;;  %v653_v7 = vld [vmem:[#allocation5 + $0x10] sm:$0xff]   ;;  %v654_v8 = vld [vmem:[#allocation5 + $0x8] sm:$0xff]  }
  0x1f   :  { %580 = vmatprep.subr.bf16.mxu0 %v649_v1  ;;  %627 = vmatprep.subr.bf16.mxu1 %v649_v1  ;;  %v658_v5 = vld [vmem:[#allocation2 + $0x40] sm:$0xff]   ;;  %v657_v10 = vld [vmem:[#allocation2 + $0x8] sm:$0xff]   ;;  %v660_v12 = vld [vmem:[#allocation2 + $0x10] sm:$0xff]  }
  0x20   :  { %594 = vmatprep.mubr.bf16.mxu0 %v656_v4  ;;  %610 = vmatprep.mubr.bf16.mxu1 %v658_v5  ;;  %v655_v9 = vld [vmem:[#allocation5] sm:$0xff]   ;;  %v659_v11 = vld [vmem:[#allocation2 + $0x48] sm:$0xff]   ;;  %v662_v13 = vld [vmem:[#allocation2 + $0x50] sm:$0xff]  }
  0x21   :  { %v661_v14 = vld [vmem:[#allocation2 + $0x18] sm:$0xff]   ;;  %v664_v16 = vld [vmem:[#allocation2 + $0x20] sm:$0xff]   ;;  %v665_v18 = vld [vmem:[#allocation2 + $0x28] sm:$0xff]  }
  0x22   :  { %581 = vmatpush3.bf16.msra.mxu0 %v649_v1  ;;  %635 = vmatpush3.bf16.msra.mxu1 %v649_v1  ;;  %v663_v15 = vld [vmem:[#allocation2 + $0x58] sm:$0xff]   ;;  %v666_v17 = vld [vmem:[#allocation2 + $0x60] sm:$0xff]   ;;  %v667_v19 = vld [vmem:[#allocation2 + $0x68] sm:$0xff]  }
  0x23   :  { %582 = vmatprep.subr.bf16.mxu0 %v650_v2  ;;  %628 = vmatprep.subr.bf16.mxu1 %v650_v2  ;;  %v668_v20 = vld [vmem:[#allocation2 + $0x30] sm:$0xff]   ;;  %v669_v22 = vld [vmem:[#allocation2 + $0x38] sm:$0xff]   ;;  %v773_v29 = vld [vmem:[%s833_s2] ss:$0 sm:$0xff]  ;;  %s743_s2 = smov [#allocation7]  }
  0x24   :  { %v670_v21 = vld [vmem:[#allocation2 + $0x70] sm:$0xff]   ;;  %v671_v23 = vld [vmem:[#allocation2 + $0x78] sm:$0xff]   ;;  %s519_s24 = sshll.u32 %s743_s2, 4  ;;  %s520_s24 = int_to_ptr.vmem [resolvable:$true] %s519_s24 }
  0x25   :  { %s712_s25 = scalar_lea.vmem %s520_s24, 16  ;;  %s716_s26 = scalar_lea.vmem %s520_s24, 32 }
  0x26   :  { %583 = vmatpush3.bf16.msra.mxu0 %v650_v2  ;;  %636 = vmatpush3.bf16.msra.mxu1 %v650_v2  ;;  %p713_p10 = scmp.ne.s32.totalorder %s520_s24, %s712_s25  ;;  %p717_p11 = scmp.lt.s32.totalorder %s520_s24, %s520_s24 }
  0x27   :  { %584 = vmatprep.subr.bf16.mxu0 %v651_v3  ;;  %629 = vmatprep.subr.bf16.mxu1 %v651_v3  ;;  %p718_p12 = scmp.lt.s32.totalorder %s716_s26, %s712_s25 }
  0x29   :  { %p719_p13 = por %p718_p12, %p717_p11 }
  0x2a   :  { %585 = vmatpush3.bf16.msra.mxu0 %v651_v3  ;;  %637 = vmatpush3.bf16.msra.mxu1 %v651_v3 }
  0x2b   :  { %586 = vmatprep.subr.bf16.mxu0 %v652_v6  ;;  %630 = vmatprep.subr.bf16.mxu1 %v652_v6  ;;  %p720_p0 = pnand %p719_p13, %p713_p10 }
  0x2e   :  { %587 = vmatpush3.bf16.msra.mxu0 %v652_v6  ;;  %638 = vmatpush3.bf16.msra.mxu1 %v652_v6 }
  0x2f   :  { %588 = vmatprep.subr.bf16.mxu0 %v653_v7  ;;  %631 = vmatprep.subr.bf16.mxu1 %v653_v7 }
  0x32   :  { %589 = vmatpush3.bf16.msra.mxu0 %v653_v7  ;;  %639 = vmatpush3.bf16.msra.mxu1 %v653_v7 }
  0x33   :  { %590 = vmatprep.subr.bf16.mxu0 %v654_v8  ;;  %632 = vmatprep.subr.bf16.mxu1 %v654_v8 }
  0x36   :  { %591 = vmatpush3.bf16.msra.mxu0 %v654_v8  ;;  %640 = vmatpush3.bf16.msra.mxu1 %v654_v8 }
  0x37   :  { %592 = vmatprep.subr.bf16.mxu0 %v655_v9  ;;  %633 = vmatprep.subr.bf16.mxu1 %v655_v9 }
  0x3a   :  { %593 = vmatpush3.bf16.msra.mxu0 %v655_v9  ;;  %641 = vmatpush3.bf16.msra.mxu1 %v655_v9 }
  0x3d   :  { %595 = vmatmul.mubr.bf16.vlgmr.msra.gmra.mxu0 %v657_v10  ;;  %611 = vmatmul.mubr.bf16.vlgmr.msra.gmra.mxu1 %v659_v11 }
  0x3e   :  { %598 = vmatprep.mubr.bf16.mxu0 %v660_v12  ;;  %614 = vmatprep.mubr.bf16.mxu1 %v662_v13 }
  0x45   :  { %599 = vmatmul.mubr.bf16.gmra.mxu0 %v661_v14  ;;  %615 = vmatmul.mubr.bf16.gmra.mxu1 %v663_v15 }
  0x46   :  { %602 = vmatprep.mubr.bf16.mxu0 %v664_v16  ;;  %618 = vmatprep.mubr.bf16.mxu1 %v666_v17 }
  0x4d   :  { %603 = vmatmul.mubr.bf16.gmra.mxu0 %v665_v18  ;;  %619 = vmatmul.mubr.bf16.gmra.mxu1 %v667_v19 }
  0x4e   :  { %606 = vmatprep.mubr.bf16.mxu0 %v668_v20  ;;  %622 = vmatprep.mubr.bf16.mxu1 %v670_v21 }
  0x55   :  { %607 = vmatmul.mubr.bf16.gmra.mxu0 %v669_v22  ;;  %623 = vmatmul.mubr.bf16.gmra.mxu1 %v671_v23 }
  0xfd   :  { %v596_v25 = vpop.f32.mrf.mxu0  ;;  %v612_v26 = vpop.f32.mrf.mxu1 }
  0xfe   :  { %v286_v34 = vadd.f32 %v596_v25, %v773_v29  ;;  %v350_v37 = vadd.f32 %v612_v26, %v773_v29 }
  0xff   :  { %v277_v27 = vpop.f32.mrf.mxu0  ;;  %v341_v28 = vpop.f32.mrf.mxu1 }
 0x100   :  { %v278_v38 = vadd.f32 %v773_v29, %v277_v27  ;;  %v406_v41 = vmax.f32 %v286_v34, 0.0  ;;  %v342_v42 = vadd.f32 %v773_v29, %v341_v28  ;;  %v422_v47 = vmax.f32 %v350_v37, 0.0 }
 0x101   :  { %v597_v30 = vpop.f32.mrf.mxu0  ;;  %v613_v31 = vpop.f32.mrf.mxu1 }
 0x102   :  { %v289_v43 = vadd.f32 %v597_v30, %v773_v29  ;;  %v353_v44 = vadd.f32 %v613_v31, %v773_v29  ;;  %v404_v49 = vmax.f32 %v278_v38, 0.0  ;;  %v784_v54 = vadd.f32 1e-07, %v406_v41 }
 0x103   :  { %v280_v32 = vpop.f32.mrf.mxu0  ;;  %v344_v33 = vpop.f32.mrf.mxu1  ;;  %v420_v55 = vmax.f32 %v342_v42, 0.0  ;;  %v789_v63 = vadd.f32 1e-07, %v422_v47 }
 0x104   :  { %v281_v50 = vadd.f32 %v773_v29, %v280_v32  ;;  %v345_v56 = vadd.f32 %v773_v29, %v344_v33  ;;  %v407_v57 = vmax.f32 %v289_v43, 0.0  ;;  %v423_v58 = vmax.f32 %v353_v44, 0.0 }
 0x105   :  { %v600_v35 = vpop.f32.mrf.mxu0  ;;  %v616_v36 = vpop.f32.mrf.mxu1  ;;  %v436_v3 = vadd.f32 1e-07, %v404_v49  ;;  %v794_v9 = vadd.f32 1e-07, %v420_v55 }
 0x106   :  { %v302_v48 = vadd.f32 %v600_v35, %v773_v29  ;;  %v366_v59 = vadd.f32 %v616_v36, %v773_v29  ;;  %v405_v4 = vmax.f32 %v281_v50, 0.0  ;;  %v421_v10 = vmax.f32 %v345_v56, 0.0 }
 0x107   :  { %v293_v39 = vpop.f32.mrf.mxu0  ;;  %v357_v40 = vpop.f32.mrf.mxu1  ;;  %v439_v13 = vadd.f32 1e-07, %v407_v57  ;;  %v798_v14 = vadd.f32 1e-07, %v423_v58 }
 0x108   :  { %v294_v51 = vadd.f32 %v773_v29, %v293_v39  ;;  %v410_v0 = vmax.f32 %v302_v48, 0.0  ;;  %v358_v1 = vadd.f32 %v773_v29, %v357_v40  ;;  %v426_v15 = vmax.f32 %v366_v59, 0.0 }
 0x109   :  { %v601_v45 = vpop.f32.mrf.mxu0  ;;  %v617_v46 = vpop.f32.mrf.mxu1  ;;  %v437_v23 = vadd.f32 1e-07, %v405_v4  ;;  %v801_v30 = vadd.f32 1e-07, %v421_v10 }
 0x10a   :  { %v305_v60 = vadd.f32 %v601_v45, %v773_v29  ;;  %v408_v5 = vmax.f32 %v294_v51, 0.0  ;;  %v369_v11 = vadd.f32 %v617_v46, %v773_v29  ;;  %v442_v19 = vadd.f32 1e-07, %v410_v0 }
 0x10b   :  { %v296_v52 = vpop.f32.mrf.mxu0  ;;  %v360_v53 = vpop.f32.mrf.mxu1  ;;  %v424_v20 = vmax.f32 %v358_v1, 0.0  ;;  %v805_v34 = vadd.f32 1e-07, %v426_v15 }
 0x10c   :  { %v297_v6 = vadd.f32 %v773_v29, %v296_v52  ;;  %v411_v16 = vmax.f32 %v305_v60, 0.0  ;;  %v440_v24 = vadd.f32 1e-07, %v408_v5  ;;  %v427_v31 = vmax.f32 %v369_v11, 0.0 }
 0x10d   :  { %v604_v61 = vpop.f32.mrf.mxu0  ;;  %v620_v62 = vpop.f32.mrf.mxu1  ;;  %v361_v32 = vadd.f32 %v773_v29, %v360_v53  ;;  %v470_v40 = vmax.f32 %v784_v54, %v442_v19  ;;  %v809_v41 = vadd.f32 1e-07, %v424_v20 }
 0x10e   :  { %v318_v2 = vadd.f32 %v604_v61, %v773_v29  ;;  %v409_v25 = vmax.f32 %v297_v6, 0.0  ;;  %v443_v35 = vadd.f32 1e-07, %v411_v16  ;;  %v382_v36 = vadd.f32 %v620_v62, %v773_v29 }
 0x10f   :  { %v309_v7 = vpop.f32.mrf.mxu0  ;;  %v373_v8 = vpop.f32.mrf.mxu1  ;;  %v468_v44 = vmax.f32 %v436_v3, %v440_v24  ;;  %v459_v50 = vadd.f32 1e-07, %v427_v31  ;;  %v425_v51 = vmax.f32 %v361_v32, 0.0 }
 0x110   :  { %v310_v12 = vadd.f32 %v773_v29, %v309_v7  ;;  %v414_v21 = vmax.f32 %v318_v2, 0.0  ;;  %v441_v45 = vadd.f32 1e-07, %v409_v25  ;;  %v471_v55 = vmax.f32 %v439_v13, %v443_v35 }
 0x111   :  { %v605_v17 = vpop.f32.mrf.mxu0  ;;  %v621_v18 = vpop.f32.mrf.mxu1  ;;  %v430_v56 = vmax.f32 %v382_v36, 0.0  ;;  %v374_v54 = vadd.f32 %v773_v29, %v373_v8  ;;  %v457_v31 = vadd.f32 1e-07, %v425_v51 }
 0x112   :  { %v321_v22 = vadd.f32 %v605_v17, %v773_v29  ;;  %v412_v26 = vmax.f32 %v310_v12, 0.0  ;;  %v446_v42 = vadd.f32 1e-07, %v414_v21  ;;  %v469_v1 = vmax.f32 %v437_v23, %v441_v45 }
 0x113   :  { %v312_v27 = vpop.f32.mrf.mxu0  ;;  %v376_v28 = vpop.f32.mrf.mxu1  ;;  %v385_v4 = vadd.f32 %v621_v18, %v773_v29  ;;  %v428_v18 = vmax.f32 %v374_v54, 0.0 }
 0x114   :  { %v313_v33 = vadd.f32 %v773_v29, %v312_v27  ;;  %v415_v37 = vmax.f32 %v321_v22, 0.0  ;;  %v444_v46 = vadd.f32 1e-07, %v412_v26  ;;  %v474_v60 = vmax.f32 %v470_v40, %v446_v42 }
 0x115   :  { %v608_v38 = vpop.f32.mrf.mxu0  ;;  %v624_v39 = vpop.f32.mrf.mxu1  ;;  %v377_v8 = vadd.f32 %v773_v29, %v376_v28  ;;  %v431_v23 = vmax.f32 %v385_v4, 0.0  ;;  %v460_v40 = vadd.f32 1e-07, %v428_v18 }
 0x116   :  { %v334_v43 = vadd.f32 %v608_v38, %v773_v29  ;;  %v413_v47 = vmax.f32 %v313_v33, 0.0  ;;  %v447_v57 = vadd.f32 1e-07, %v415_v37  ;;  %v472_v2 = vmax.f32 %v468_v44, %v444_v46 }
 0x117   :  { %v325_v48 = vpop.f32.mrf.mxu0  ;;  %v389_v49 = vpop.f32.mrf.mxu1  ;;  %v398_v13 = vadd.f32 %v624_v39, %v773_v29  ;;  %v429_v32 = vmax.f32 %v377_v8, 0.0  ;;  %v462_v39 = vadd.f32 1e-07, %v430_v56  ;;  %v463_v42 = vadd.f32 1e-07, %v431_v23 }
 0x118   :  { %v418_v52 = vmax.f32 %v334_v43, 0.0  ;;  %v326_v53 = vadd.f32 %v773_v29, %v325_v48  ;;  %v445_v3 = vadd.f32 1e-07, %v413_v47  ;;  %v475_v12 = vmax.f32 %v471_v55, %v447_v57 }
 0x119   :  { %v609_v58 = vpop.f32.mrf.mxu0  ;;  %v625_v59 = vpop.f32.mrf.mxu1  ;;  %v390_v24 = vadd.f32 %v773_v29, %v389_v49  ;;  %v434_v33 = vmax.f32 %v398_v13, 0.0 }
 0x11a   :  { %v450_v61 = vadd.f32 1e-07, %v418_v52  ;;  %v416_v62 = vmax.f32 %v326_v53, 0.0  ;;  %v337_v0 = vadd.f32 %v609_v58, %v773_v29  ;;  %v401_v15 = vadd.f32 %v625_v59, %v773_v29 }
 0x11b   :  { %v328_v5 = vpop.f32.mrf.mxu0  ;;  %v392_v16 = vpop.f32.mrf.mxu1  ;;  %v473_v22 = vmax.f32 %v469_v1, %v445_v3  ;;  %v432_v43 = vmax.f32 %v390_v24, 0.0  ;;  %v466_v46 = vadd.f32 1e-07, %v434_v33 }
 0x11c   :  { %v478_v6 = vmax.f32 %v474_v60, %v450_v61  ;;  %v448_v7 = vadd.f32 1e-07, %v416_v62  ;;  %v419_v10 = vmax.f32 %v337_v0, 0.0  ;;  %v329_v11 = vadd.f32 %v773_v29, %v328_v5  ;;  %v510_v0 = vld [vmem:[#allocation7] sm:$0x1] }
 0x11d   :  { %v393_v28 = vadd.f32 %v773_v29, %v392_v16  ;;  %v435_v35 = vmax.f32 %v401_v15, 0.0  ;;  %v461_v29 = vadd.f32 1e-07, %v429_v32  ;;  %v464_v52 = vadd.f32 1e-07, %v432_v43 }
 0x11e   :  { %v482_v17 = vmax.f32 %v478_v6, %v789_v63  ;;  %v476_v19 = vmax.f32 %v472_v2, %v448_v7  ;;  %v451_v20 = vadd.f32 1e-07, %v419_v10  ;;  %v417_v21 = vmax.f32 %v329_v11, 0.0 }
 0x11f   :  { %v433_v45 = vmax.f32 %v393_v28, 0.0  ;;  %v467_v47 = vadd.f32 1e-07, %v435_v35 }
 0x120   :  { %v480_v25 = vmax.f32 %v476_v19, %v794_v9  ;;  %v479_v26 = vmax.f32 %v475_v12, %v451_v20  ;;  %v449_v27 = vadd.f32 1e-07, %v417_v21  ;;  %v486_v63 = vmax.f32 %v482_v17, %v805_v34 }
 0x121   :  { %v465_v53 = vadd.f32 1e-07, %v433_v45 }
 0x122   :  { %v483_v36 = vmax.f32 %v479_v26, %v798_v14  ;;  %v484_v37 = vmax.f32 %v480_v25, %v809_v41  ;;  %v477_v38 = vmax.f32 %v473_v22, %v449_v27  ;;  %v490_v48 = vmax.f32 %v486_v63, %v462_v39 }
 0x124   :  { %v481_v9 = vmax.f32 %v477_v38, %v801_v30  ;;  %v487_v44 = vmax.f32 %v483_v36, %v459_v50  ;;  %v488_v49 = vmax.f32 %v484_v37, %v460_v40  ;;  %v494_v55 = vmax.f32 %v490_v48, %v466_v46 }
 0x126   :  { %v491_v51 = vmax.f32 %v487_v44, %v463_v42  ;;  %v485_v34 = vmax.f32 %v481_v9, %v457_v31  ;;  %v492_v56 = vmax.f32 %v488_v49, %v464_v52 }
 0x128   :  { %v495_v14 = vmax.f32 %v491_v51, %v467_v47  ;;  %v489_v41 = vmax.f32 %v485_v34, %v461_v29 }
 0x12a   :  { %v493_v57 = vmax.f32 %v489_v41, %v465_v53  ;;  %v497_v54 = vmax.f32 %v494_v55, %v495_v14 }
 0x12c   :  { %v496_v58 = vmax.f32 %v492_v56, %v493_v57 }
 0x12e   :  { %v498_v59 = vmax.f32 %v496_v58, %v497_v54 }
 0x130   :  { %v499_v30 = vrot.slane %v498_v59, 4 }
 0x132   :  { %v500_v50 = vmax.f32 %v498_v59, %v499_v30 }
 0x134   :  { %v501_v60 = vrot.slane %v500_v50, 2 }
 0x136   :  { %v502_v61 = vmax.f32 %v500_v50, %v501_v60 }
 0x138   :  { %v503_v62 = vrot.slane %v502_v61, 1 }
 0x13a   :  { %v504_v1 = vmax.f32 %v502_v61, %v503_v62 }
 0x13c   :  { %v511_v2 = vmax.f32 %v510_v0, %v504_v1 }
 0x13e   :  { %512 = vst [vmem:[#allocation7] sm:$0x1] %v511_v2 }
 0x13f   :  { %723 = shalt.err (!%p720_p0)
}
 0x140   :  { %522 = dma.vmem_to_hbm [thread:$0]  %s520_s24, 16, %s834_s3, [#allocation4]  }
 0x141   :  { %736 = dma.done.wait [#allocation4], 16  }
 0x142   :  { %737 = vsyncadd [#allocation4], 4294967280 }
 0x143   :  { %526 = vsyncpa [#allocation3], 1 }
 0x144   :  { %527 = vsyncpa [#allocation6], 1 }
 0x145   :  { %528 = vsyncpa [#allocation4], 1 }

</bundles_post_ra>
